<compile_context>
chip_gen: v6e
topology: v6e:2x2x1
jax: 0.10.0
libtpu: 0.0.40
codegen_flags: <defaults>
</compile_context>

<pallas_src>
import jax
import jax.numpy as jnp
from jax.experimental import pallas as pl
from jax.experimental.pallas import tpu as pltpu

IN_FEATURES = 2
OUT_FEATURES = 1
_LANES = 128                          # samples per packed row
_PACKED_COLS = _LANES * IN_FEATURES   # 256 interleaved f32 per packed row


def _round_up(a: int, m: int) -> int:
    return ((a + m - 1) // m) * m


def linear_kernel(b_ref, x_ref, w_ref, o_ref):
    # b_ref: SMEM (1,)        f32 bias scalar
    # x_ref: VMEM (bm, 256)   128 samples/row, features interleaved [f0,f1,..]
    # w_ref: VMEM (256, 128)  banded weights: W[2j, j] = w0, W[2j+1, j] = w1
    # o_ref: VMEM (bm, 128)   lane/sublane-dense outputs (sample j -> lane j)
    acc = jnp.dot(x_ref[...], w_ref[...], preferred_element_type=jnp.float32)
    o_ref[...] = (acc + b_ref[0]).astype(o_ref.dtype)


def linear_forward(x, w, b, *, block_rows: int = 4096, min_kernel_n: int = 65536):
    """y = x @ w.T + b with x: (N, 2), w: (1, 2) (PyTorch layout), b: (1,).

    Returns y: (N, 1), matching torch.nn.Linear(2, 1).
    """
    n, k = x.shape
    assert k == IN_FEATURES and w.shape == (OUT_FEATURES, IN_FEATURES)
    out_dtype = x.dtype
    w = w.astype(jnp.float32)
    b = b.astype(jnp.float32)

    # Small-batch fallback: launch/DMA overhead dominates any kernel here.
    if n < min_kernel_n:
        return (x.astype(jnp.float32) @ w.T + b).astype(out_dtype)

    # Kernel math is done in f32 (no bf16 VALU path; matters on v5e).
    if x.dtype != jnp.float32:
        x = x.astype(jnp.float32)

    # Pad at most to the next multiple of 128 (only if needed), never to a
    # multiple of the block size.
    n_pad = _round_up(n, _LANES)
    if n_pad != n:
        x = jnp.pad(x, ((0, n_pad - n), (0, 0)))
    n_rows = n_pad // _LANES
    x_packed = x.reshape(n_rows, _PACKED_COLS)  # free row-major reshape

    # Block size: multiple of 8 sublanes, capped so double-buffered blocks fit
    # comfortably in scoped VMEM on every generation (v7x has 64 MiB total).
    bm = max(8, min(_round_up(block_rows, 8), 8192))
    bm = min(bm, _round_up(n_rows, 8))
    grid = (pl.cdiv(n_rows, bm),)

    # Banded (256, 128) weight matrix: column j picks w0*f0 + w1*f1 of sample j.
    col = jnp.arange(_LANES)[None, :]
    row = jnp.arange(_PACKED_COLS)[:, None]
    w_band = (jnp.where(row == 2 * col, w[0, 0], 0.0)
              + jnp.where(row == 2 * col + 1, w[0, 1], 0.0)).astype(jnp.float32)

    # VMEM budget: double-buffered x/out blocks + resident weight tile.
    block_bytes = bm * _PACKED_COLS * 4 + bm * _LANES * 4
    vmem_needed = 2 * block_bytes + 2 * w_band.size * 4 + (2 << 20)
    vmem_limit = int(min(max(vmem_needed, 32 << 20), 48 << 20))

    y_packed = pl.pallas_call(
        linear_kernel,
        out_shape=jax.ShapeDtypeStruct((n_rows, _LANES), jnp.float32),
        grid=grid,
        in_specs=[
            # Bias: one f32 scalar resident in SMEM.
            pl.BlockSpec(memory_space=pltpu.MemorySpace.SMEM),
            # Activations: (bm, 256) lane/sublane-dense streaming blocks.
            pl.BlockSpec((bm, _PACKED_COLS), lambda i: (i, 0)),
            # Banded weights: constant block index -> stays VMEM-resident.
            pl.BlockSpec((_PACKED_COLS, _LANES), lambda i: (0, 0)),
        ],
        out_specs=pl.BlockSpec((bm, _LANES), lambda i: (i, 0)),
        compiler_params=pltpu.CompilerParams(
            dimension_semantics=("parallel",),  # shard grid across TCs on v7x
            vmem_limit_bytes=vmem_limit,
        ),
        cost_estimate=pl.CostEstimate(
            flops=4 * n_pad,
            transcendentals=0,
            bytes_accessed=(IN_FEATURES + OUT_FEATURES) * 4 * n_pad,
        ),
    )(b.reshape(1), x_packed, w_band)

    y = y_packed.reshape(n_pad)
    if n_pad != n:
        y = y[:n]
    return y.reshape(n, OUT_FEATURES).astype(out_dtype)


if __name__ == "__main__":
    key = jax.random.PRNGKey(0)
    k_x, k_w, k_b = jax.random.split(key, 3)

    # Module-consistent small input: x is (batch, 2).
    batch = 8
    x = jax.random.normal(k_x, (batch, IN_FEATURES), dtype=jnp.float32)

    # Parameter init matching torch.nn.Linear's default uniform(+-1/sqrt(fan_in)).
    bound = 1.0 / (IN_FEATURES ** 0.5)
    w = jax.random.uniform(k_w, (OUT_FEATURES, IN_FEATURES), jnp.float32,
                           -bound, bound)
    b = jax.random.uniform(k_b, (OUT_FEATURES,), jnp.float32, -bound, bound)

    # 1) Module-sized call (batch=8): small-N fast path.
    y_small = jax.block_until_ready(linear_forward(x, w, b))
    assert y_small.shape == (batch, OUT_FEATURES)
    assert jnp.allclose(y_small, x @ w.T + b, atol=1e-5, rtol=1e-5)

    # 2) Large-N streaming path: exercises the Pallas kernel (4 grid steps).
    #    Tolerance is slightly loosened only defensively, in case the MXU
    #    evaluates the f32 contraction with reduced-precision passes.
    big_n = 131072  # 1024 packed rows
    xb = jax.random.normal(jax.random.PRNGKey(1), (big_n, IN_FEATURES), jnp.float32)
    yb = jax.block_until_ready(
        linear_forward(xb, w, b, block_rows=256, min_kernel_n=0))
    assert yb.shape == (big_n, OUT_FEATURES)
    assert jnp.allclose(yb, xb @ w.T + b, atol=2e-3, rtol=2e-3)

    # 3) Ragged N (not a multiple of 128) with a partial last grid block.
    odd_n = 3000
    xo = jax.random.normal(jax.random.PRNGKey(2), (odd_n, IN_FEATURES), jnp.float32)
    yo = jax.block_until_ready(
        linear_forward(xo, w, b, block_rows=16, min_kernel_n=0))
    assert yo.shape == (odd_n, OUT_FEATURES)
    assert jnp.allclose(yo, xo @ w.T + b, atol=2e-3, rtol=2e-3)

    print("KERNEL_OK")
</pallas_src>

<mosaic_0001>
module attributes {stable_mosaic.version = 11 : i64} {
  func.func @linear_kernel(%arg0: i32, %arg1: memref<1xf32, #tpu.memory_space<smem>>, %arg2: memref<256x256xf32, #tpu.memory_space<vmem>>, %arg3: memref<256x128xf32, #tpu.memory_space<vmem>>, %arg4: memref<256x128xf32, #tpu.memory_space<vmem>>) attributes {dimension_semantics = [#tpu.dimension_semantics<parallel>], iteration_bounds = array<i64: 4>, scalar_prefetch = 0 : i64, scratch_operands = 0 : i64, tpu.core_type = #tpu.core_type<tc>, window_params = [{transform_indices = @transform_0, window_bounds = array<i64: 1>}, {transform_indices = @transform_1, window_bounds = array<i64: 256, 256>}, {pipeline_mode = #tpu.pipeline_mode<synchronous>, transform_indices = @transform_2, window_bounds = array<i64: 256, 128>}, {transform_indices = @transform_3, window_bounds = array<i64: 256, 128>}]} {
    %c0 = arith.constant 0 : index
    %c0_0 = arith.constant 0 : index
    %0 = vector.load %arg2[%c0, %c0_0] : memref<256x256xf32, #tpu.memory_space<vmem>>, vector<256x256xf32>
    %c0_1 = arith.constant 0 : index
    %c0_2 = arith.constant 0 : index
    %1 = vector.load %arg3[%c0_1, %c0_2] : memref<256x128xf32, #tpu.memory_space<vmem>>, vector<256x128xf32>
    %cst = arith.constant dense<0.000000e+00> : vector<256x128xf32>
    %2 = tpu.matmul %0, %1, %cst {dimension_numbers = #tpu.dot_dimension_numbers<[1], [0], [0], [1], [0, 0, 1, 1], [], []>} : vector<256x256xf32>, vector<256x128xf32>, vector<256x128xf32> -> vector<256x128xf32>
    %c0_3 = arith.constant 0 : index
    %3 = memref.load %arg1[%c0_3] : memref<1xf32, #tpu.memory_space<smem>>
    %4 = vector.broadcast %3 : f32 to vector<256x128xf32>
    %5 = arith.addf %2, %4 : vector<256x128xf32>
    %c0_4 = arith.constant 0 : index
    %c0_5 = arith.constant 0 : index
    %6 = vector.load %arg4[%c0_4, %c0_5] : memref<256x128xf32, #tpu.memory_space<vmem>>, vector<256x128xf32>
    tpu.vector_store %arg4[%c0_4, %c0_5], %5 {strides = array<i32>} : memref<256x128xf32, #tpu.memory_space<vmem>>, vector<256x128xf32>,
    return
  }
  func.func @transform_0(%arg0: i32) -> i32 {
    %c0_i32 = arith.constant 0 : i32
    %c0_i32_0 = arith.constant 0 : i32
    return %c0_i32 : i32
  }
  func.func @transform_1(%arg0: i32) -> (i32, i32) {
    %c0_i32 = arith.constant 0 : i32
    %c0_i32_0 = arith.constant 0 : i32
    return %arg0, %c0_i32 : i32, i32
  }
  func.func @transform_2(%arg0: i32) -> (i32, i32) {
    %c0_i32 = arith.constant 0 : i32
    %c0_i32_0 = arith.constant 0 : i32
    %c0_i32_1 = arith.constant 0 : i32
    return %c0_i32, %c0_i32_0 : i32, i32
  }
  func.func @transform_3(%arg0: i32) -> (i32, i32) {
    %c0_i32 = arith.constant 0 : i32
    %c0_i32_0 = arith.constant 0 : i32
    return %arg0, %c0_i32 : i32, i32
  }
}

</mosaic_0001>

<bundles_post_ra>
// kernel: tpu_custom_call.1
= control target key start
LH: loop header
LB: loop body
LE: loop exit
PB: predicated region body
PF: predicated region fallthrough
CT: control target
= control target key end

     0   :  { %s1340_s0 = inlined_call_operand.<no memory space> [shape: f32[1], index: 0, kind: input, shape index: {}]   ;;  %s1341_s1 = inlined_call_operand.hbm [shape: f32[1024,256], index: 1, kind: input, shape index: {}]   ;;  %s1342_s2 = inlined_call_operand.hbm [shape: f32[256,128], index: 2, kind: input, shape index: {}]   ;;  %s1343_s3 = inlined_call_operand.hbm [shape: f32[1024,128], index: 3, kind: output, shape index: {}]  }
   0x1   :  { %8 = sst [smem:[#allocation2]] %s1340_s0 }
   0x2   :  { %9 = vsyncpa [#allocation4], 0 }
   0x3   :  { %11 = vsyncpa [#allocation4 + $0x1], 0 }
   0x4   :  { %12 = vsyncpa [#allocation7], 0 }
   0x5   :  { %13 = vsyncpa [#allocation5], 0 }
   0x6   :  { %15 = vsyncpa [#allocation5 + $0x1], 0  ;;  %s965_s14 = smov 0   ;;  %s967_s15 = smov 0  }
   0x7   :  { %s969_s16 = smov 0   ;;  %s971_s17 = smov 0  }
   0x8 LB: > { %s986_s0 = sadd.s32 4294967295, %s930_s17   ;;  %s660_s18 = sadd.s32 4294967294, %s930_s17   ;;  %s930_s17 = sphi %s971_s17, %s1364_s17   ;;  %s926_s16 = sphi %s969_s16, %s1363_s16   ;;  %s922_s15 = sphi %s967_s15, %s1362_s15   ;;  %s918_s14 = sphi %s965_s14, %s1361_s14  }
   0x9   : > { %p62_p0 = scmp.ne.s32.totalorder %s922_s15, %s918_s14  ;;  %p1344_p1 = scmp.eq.s32.totalorder %s986_s0, 0 }
   0xa   : > { %p113_p3 = scmp.eq.s32.totalorder %s660_s18, 3  ;;  %p661_p5 = scmp.ge.s32.totalorder %s930_s17, 1 }
   0xb   : > { %p995_p4 = por %p1344_p1, %p62_p0  ;;  %p120_p7 = scmp.lt.s32.totalorder %s930_s17, 5 }
   0xc   : > { %p1000_p6 = por %p113_p3, %p62_p0  ;;  %s932_s22 = smov [#allocation6]  }
   0xd   : > { %s1348_s19 = scalar_select %p995_p4, 1, 0 }
   0xe   : > { %s1349_s20 = scalar_select %p1000_p6, 1, 0 }
   0xf   : > { %p1005_p8 = pnand %p661_p5, %p120_p7  ;;  %s135_s23 = sshll.u32 %s932_s22, 4  ;;  %s136_s23 = int_to_ptr.vmem [resolvable:$true] %s135_s23 }
  0x10   : > { %s1018_s25 = sadd.s32 1, %s930_s17   ;;  %s49_s26 = sadd.s32 1, %s926_s16 }
  0x11   : > { %s1350_s21 = scalar_select %p1005_p8, 1, 0 }
  0x12   : > { %p752_p9 = pneg %p1005_p8  ;;  %s46_s27 = ssub.s32 %s930_s17, %s1018_s25 }
  0x13   : > { %s819_s28 = scalar_lea.vmem %s136_s23, 4096  ;;  %p827_p3 = scmp.lt.s32.totalorder %s136_s23, %s136_s23 }
  0x14   : > { %p1013_p10 = pnand %p752_p9, %p1344_p1  ;;  %p820_p12 = scmp.ne.s32.totalorder %s136_s23, %s819_s28 }
  0x15   : > { %p828_p5 = scmp.lt.s32.totalorder %s819_s28, %s819_s28 }
  0x16   : > { %p810_p11 = pneg %p1013_p10 }
  0x17   : > { %p829_p7 = por %p828_p5, %p827_p3 }
  0x18   : > { %p822_p13 = pnand %p820_p12, %p810_p11 }
  0x1a   : > { %p823_p0 = pneg %p822_p13 }
  0x1c   : > { %p830_p2 = pnand %p829_p7, %p823_p0 }
  0x1e   : > { %833 = shalt.err (!%p830_p2)
}
  0x1f   : > { %s933_s29 = smov 128   ;;  %s934_s30 = smov 8  }
  0x20   : > { %755 = dma.hbm_to_vmem [thread:$0]  (!%p1013_p10), %s1342_s2, 4096, %s136_s23, [#allocation7], %s933_s29, %s933_s29, %s934_s30  }
  0x21   : > { %p47_p9 = scmp.eq.s32.totalorder %s46_s27, 0  ;;  %p56_p11 = scmp.ne.s32.totalorder %s926_s16, %s922_s15 }
  0x22   : > { %p57_p12 = scmp.eq.s32.totalorder %s930_s17, 0  ;;  %p765_p2 = scmp.lt.s32.totalorder %s930_s17, 4 }
  0x23   : > { %s1035_s6 = scalar_select %p47_p9, %s926_s16, %s49_s26  }
  0x24   : > { %p58_p13 = por %p57_p12, %p56_p11  ;;  %p1352_p0 = scmp.eq.s32.totalorder %s986_s0, 3 }
  0x25   : > { %s149_s8 = sand.u32 1, %s926_s16   ;;  %s678_s9 = sshll.u32 %s930_s17, 13 }
  0x26   : > { %p1039_p3 = por %p1352_p0, %p56_p11  ;;  %s664_s10 = sshll.u32 %s149_s8, 9 }
  0x27   : > { %s1048_s13 = scalar_lea.hbm %s1341_s1, %s678_s9  ;;  %s153_s18 = scalar_lea.vmem [#allocation3], %s664_s10 }
  0x28   : > { %s1353_s7 = scalar_select %p1039_p3, 1, 0 }
  0x29   : > { %s161_s22 = sshll.u32 %s153_s18, 4  ;;  %p1050_p10 = pnand %p765_p2, %p58_p13  ;;  %s1054_s22 = int_to_ptr.vmem [resolvable:$true] %s161_s22 }
  0x2a   : > { %s1056_s24 = scalar_lea.sflag [#allocation4], %s149_s8  ;;  %s834_s26 = scalar_lea.hbm %s1048_s13, 8192 }
  0x2b   : > { %p835_p5 = scmp.ne.s32.totalorder %s1048_s13, %s834_s26  ;;  %p836_p7 = pneg %p1050_p10 }
  0x2c   : > { %s839_s29 = scalar_lea.hbm %s1341_s1, 32768  ;;  %p840_p12 = scmp.lt.s32.totalorder %s1048_s13, %s1341_s1 }
  0x2d   : > { %p837_p9 = pnand %p836_p7, %p835_p5  ;;  %p841_p2 = scmp.lt.s32.totalorder %s839_s29, %s834_s26 }
  0x2f   : > { %p838_p11 = pneg %p837_p9  ;;  %p842_p13 = por %p841_p2, %p840_p12 }
  0x31   : > { %p843_p0 = pnand %p842_p13, %p838_p11 }
  0x33   : > { %846 = shalt.err (!%p843_p0)
}
  0x34   : > { %s847_s5 = scalar_lea.vmem %s1054_s22, 8192  ;;  %s935_s8 = smov [#allocation3]  }
  0x35   : > { %p848_p1 = scmp.ne.s32.totalorder %s1054_s22, %s847_s5  ;;  %s852_s9 = sshll.u32 %s935_s8, 4  ;;  %s853_s9 = int_to_ptr.vmem [resolvable:$false] %s852_s9 }
  0x36   : > { %s854_s10 = scalar_lea.vmem %s853_s9, 16384  ;;  %p855_p9 = scmp.lt.s32.totalorder %s1054_s22, %s853_s9 }
  0x37   : > { %p850_p6 = pnand %p848_p1, %p836_p7  ;;  %p856_p3 = scmp.lt.s32.totalorder %s854_s10, %s847_s5 }
  0x39   : > { %p851_p5 = pneg %p850_p6  ;;  %p857_p4 = por %p856_p3, %p855_p9 }
  0x3b   : > { %p858_p8 = pnand %p857_p4, %p851_p5 }
  0x3d   : > { %861 = shalt.err (!%p858_p8)
}
  0x3e   : > { %s936_s11 = smov 256   ;;  %s937_s12 = smov 16  }
  0x3f   : > { %759 = dma.hbm_to_vmem [thread:$0]  (!%p1050_p10), %s1048_s13, 8192, %s1054_s22, %s1056_s24, %s936_s11, %s936_s11, %s937_s12  }
  0x40   : > { %p1355_p1 = scmp.ne.s32.totalorder %s1350_s21, 0 }
  0x41   : > { %s1080_s18 = sand.u32 (!%p1355_p1), 1, %s922_s15   ;;  %p1356_p4 = scmp.ne.s32.totalorder (!%p1355_p1), %s1348_s19, 0 }
  0x42   : > { %173 = sbr.rel (%p1355_p1) target bundleno = 410 (0x19a), region = 32  ;;  %s669_s26 = sshll.u32 (!%p1355_p1), %s1080_s18, 9 }
  0x43   : > { %s176_s27 = scalar_lea.sflag (!%p1355_p1), [#allocation4], %s1080_s18  ;;  %s1084_s28 = scalar_lea.vmem (!%p1355_p1), [#allocation3], %s669_s26 }
  0x47   : > { %905 = dma.done.wait (%p1356_p4), %s176_s27, 8192  }
  0x48   : > { %907 = vsyncadd (%p1356_p4), %s176_s27, 4294959104  ;;  %p1357_p6 = scmp.eq.s32.totalorder %s986_s0, 0 }
  0x4a   : > { %909 = dma.done.wait (%p1357_p6), [#allocation7], 4096   ;;  %p1358_p8 = pmov %p1357_p6 }
  0x4b   : > { %v938_v0 = vmov 0.0   ;;  %v287_v1 = vld [vmem:[#allocation6 + $0x78] sm:$0xff]  ;;  %v286_v2 = vld [vmem:[#allocation6 + $0x70] sm:$0xff]  ;;  %v285_v3 = vld [vmem:[#allocation6 + $0x68] sm:$0xff]  ;;  %s304_s19 = sld [smem:[#allocation2]]  ;;  %s671_s21 = sshll.u32 %s1080_s18, 8 }
  0x4c   : > { %911 = vsyncadd (%p1358_p8), [#allocation7], 4294963200  ;;  %306 = vmatprep.subr.mxu0 %v938_v0  ;;  %680 = vmatprep.subr.mxu1 %v938_v0  ;;  %v284_v4 = vld [vmem:[#allocation6 + $0x60] sm:$0xff]  ;;  %v283_v5 = vld [vmem:[#allocation6 + $0x58] sm:$0xff]  ;;  %s1227_s13 = scalar_lea.vmem [#allocation8], %s671_s21  ;;  %s679_s22 = sshll.u32 %s986_s0, 12 }
  0x4d   : > { %307 = vmatpush1.msra.mxu0 %v287_v1  ;;  %712 = vmatpush1.msra.mxu1 %v287_v1  ;;  %v282_v6 = vld [vmem:[#allocation6 + $0x50] sm:$0xff]  ;;  %v281_v7 = vld [vmem:[#allocation6 + $0x48] sm:$0xff]  ;;  %v280_v8 = vld [vmem:[#allocation6 + $0x40] sm:$0xff]  ;;  %s577_s23 = sshll.u32 %s1227_s13, 4  ;;  %s1292_s30 = scalar_lea.hbm %s1343_s3, %s679_s22  ;;  %s1294_s23 = int_to_ptr.vmem [resolvable:$true] %s577_s23 }
  0x4e   : > { %308 = vmatprep.subr.mxu0 %v938_v0  ;;  %681 = vmatprep.subr.mxu1 %v938_v0  ;;  %v279_v9 = vld [vmem:[#allocation6 + $0x38] sm:$0xff]  ;;  %v278_v10 = vld [vmem:[#allocation6 + $0x30] sm:$0xff]  ;;  %v277_v11 = vld [vmem:[#allocation6 + $0x28] sm:$0xff]  ;;  %s564_s0 = scalar_lea.sflag [#allocation5], %s1080_s18  ;;  %s862_s4 = scalar_lea.vmem %s1294_s23, 4096 }
  0x4f   : > { %309 = vmatpush1.msra.mxu0 %v286_v2  ;;  %713 = vmatpush1.msra.mxu1 %v286_v2  ;;  %v276_v12 = vld [vmem:[#allocation6 + $0x20] sm:$0xff]  ;;  %v275_v13 = vld [vmem:[#allocation6 + $0x18] sm:$0xff]  ;;  %v274_v14 = vld [vmem:[#allocation6 + $0x10] sm:$0xff]  ;;  %p863_p3 = scmp.ne.s32.totalorder %s1294_s23, %s862_s4  ;;  %p1359_p10 = scmp.ne.s32.totalorder %s1353_s7, 0 }
  0x50   : > { %310 = vmatprep.subr.mxu0 %v938_v0  ;;  %682 = vmatprep.subr.mxu1 %v938_v0  ;;  %v273_v15 = vld [vmem:[#allocation6 + $0x8] sm:$0xff]  ;;  %v272_v16 = vld [vmem:[#allocation6] sm:$0xff]  ;;  %v303_v17 = vld [vmem:[#allocation6 + $0xf8] sm:$0xff]  ;;  %s939_s5 = smov [#allocation8]  }
  0x51   : > { %311 = vmatpush1.msra.mxu0 %v285_v3  ;;  %714 = vmatpush1.msra.mxu1 %v285_v3  ;;  %v302_v18 = vld [vmem:[#allocation6 + $0xf0] sm:$0xff]  ;;  %v301_v19 = vld [vmem:[#allocation6 + $0xe8] sm:$0xff]  ;;  %v300_v20 = vld [vmem:[#allocation6 + $0xe0] sm:$0xff]  ;;  %p864_p7 = pnand %p863_p3, %p1359_p10  ;;  %s866_s8 = sshll.u32 %s939_s5, 4  ;;  %s867_s8 = int_to_ptr.vmem [resolvable:$false] %s866_s8 }
  0x52   : > { %312 = vmatprep.subr.mxu0 %v938_v0  ;;  %683 = vmatprep.subr.mxu1 %v938_v0  ;;  %v299_v21 = vld [vmem:[#allocation6 + $0xd8] sm:$0xff]  ;;  %v298_v22 = vld [vmem:[#allocation6 + $0xd0] sm:$0xff]  ;;  %v297_v23 = vld [vmem:[#allocation6 + $0xc8] sm:$0xff]  ;;  %s868_s9 = scalar_lea.vmem %s867_s8, 8192  ;;  %p869_p12 = scmp.lt.s32.totalorder %s1294_s23, %s867_s8 }
  0x53   : > { %313 = vmatpush1.msra.mxu0 %v284_v4  ;;  %715 = vmatpush1.msra.mxu1 %v284_v4  ;;  %v296_v24 = vld [vmem:[#allocation6 + $0xc0] sm:$0xff]  ;;  %v295_v25 = vld [vmem:[#allocation6 + $0xb8] sm:$0xff]  ;;  %v294_v26 = vld [vmem:[#allocation6 + $0xb0] sm:$0xff]  ;;  %p865_p11 = pneg %p864_p7  ;;  %p870_p2 = scmp.lt.s32.totalorder %s868_s9, %s862_s4 }
  0x54   : > { %314 = vmatprep.subr.mxu0 %v938_v0  ;;  %684 = vmatprep.subr.mxu1 %v938_v0  ;;  %v293_v27 = vld [vmem:[#allocation6 + $0xa8] sm:$0xff]  ;;  %v292_v28 = vld [vmem:[#allocation6 + $0xa0] sm:$0xff]  ;;  %v291_v29 = vld [vmem:[#allocation6 + $0x98] sm:$0xff] }
  0x55   : > { %315 = vmatpush1.msra.mxu0 %v283_v5  ;;  %716 = vmatpush1.msra.mxu1 %v283_v5  ;;  %v290_v30 = vld [vmem:[#allocation6 + $0x90] sm:$0xff]  ;;  %v289_v31 = vld [vmem:[#allocation6 + $0x88] sm:$0xff]  ;;  %v288_v32 = vld [vmem:[#allocation6 + $0x80] sm:$0xff]  ;;  %p871_p13 = por %p870_p2, %p869_p12 }
  0x56   : > { %316 = vmatprep.subr.mxu0 %v938_v0  ;;  %685 = vmatprep.subr.mxu1 %v938_v0  ;;  %v209_v33 = vld [vmem:[%s1084_s28 + $0x8] sm:$0xff]  ;;  %v208_v35 = vld [vmem:[%s1084_s28] sm:$0xff]  ;;  %v211_v37 = vld [vmem:[%s1084_s28 + $0x18] sm:$0xff] }
  0x57   : > { %317 = vmatpush1.msra.mxu0 %v282_v6  ;;  %717 = vmatpush1.msra.mxu1 %v282_v6  ;;  %v241_v34 = vld [vmem:[%s1084_s28 + $0x108] sm:$0xff]  ;;  %v240_v36 = vld [vmem:[%s1084_s28 + $0x100] sm:$0xff]  ;;  %v243_v38 = vld [vmem:[%s1084_s28 + $0x118] sm:$0xff]  ;;  %p872_p0 = pnand %p871_p13, %p865_p11 }
  0x58   : > { %318 = vmatprep.subr.mxu0 %v938_v0  ;;  %686 = vmatprep.subr.mxu1 %v938_v0  ;;  %v210_v39 = vld [vmem:[%s1084_s28 + $0x10] sm:$0xff]  ;;  %v213_v41 = vld [vmem:[%s1084_s28 + $0x28] sm:$0xff]  ;;  %v212_v43 = vld [vmem:[%s1084_s28 + $0x20] sm:$0xff] }
  0x59   : > { %319 = vmatpush1.msra.mxu0 %v281_v7  ;;  %718 = vmatpush1.msra.mxu1 %v281_v7  ;;  %v242_v40 = vld [vmem:[%s1084_s28 + $0x110] sm:$0xff]  ;;  %v245_v42 = vld [vmem:[%s1084_s28 + $0x128] sm:$0xff]  ;;  %v244_v44 = vld [vmem:[%s1084_s28 + $0x120] sm:$0xff] }
  0x5a   : > { %320 = vmatprep.subr.mxu0 %v938_v0  ;;  %687 = vmatprep.subr.mxu1 %v938_v0  ;;  %v215_v45 = vld [vmem:[%s1084_s28 + $0x38] sm:$0xff]  ;;  %v214_v47 = vld [vmem:[%s1084_s28 + $0x30] sm:$0xff]  ;;  %v217_v49 = vld [vmem:[%s1084_s28 + $0x48] sm:$0xff] }
  0x5b   : > { %321 = vmatpush1.msra.mxu0 %v280_v8  ;;  %719 = vmatpush1.msra.mxu1 %v280_v8  ;;  %v247_v46 = vld [vmem:[%s1084_s28 + $0x138] sm:$0xff]  ;;  %v246_v48 = vld [vmem:[%s1084_s28 + $0x130] sm:$0xff]  ;;  %v249_v50 = vld [vmem:[%s1084_s28 + $0x148] sm:$0xff] }
  0x5c   : > { %322 = vmatprep.subr.mxu0 %v938_v0  ;;  %688 = vmatprep.subr.mxu1 %v938_v0  ;;  %v216_v51 = vld [vmem:[%s1084_s28 + $0x40] sm:$0xff]  ;;  %v219_v53 = vld [vmem:[%s1084_s28 + $0x58] sm:$0xff]  ;;  %v218_v55 = vld [vmem:[%s1084_s28 + $0x50] sm:$0xff] }
  0x5d   : > { %323 = vmatpush1.msra.mxu0 %v279_v9  ;;  %720 = vmatpush1.msra.mxu1 %v279_v9  ;;  %v248_v52 = vld [vmem:[%s1084_s28 + $0x140] sm:$0xff]  ;;  %v251_v54 = vld [vmem:[%s1084_s28 + $0x158] sm:$0xff]  ;;  %v250_v56 = vld [vmem:[%s1084_s28 + $0x150] sm:$0xff] }
  0x5e   : > { %324 = vmatprep.subr.mxu0 %v938_v0  ;;  %689 = vmatprep.subr.mxu1 %v938_v0  ;;  %v221_v57 = vld [vmem:[%s1084_s28 + $0x68] sm:$0xff]  ;;  %v220_v59 = vld [vmem:[%s1084_s28 + $0x60] sm:$0xff]  ;;  %v223_v61 = vld [vmem:[%s1084_s28 + $0x78] sm:$0xff] }
  0x5f   : > { %325 = vmatpush1.msra.mxu0 %v278_v10  ;;  %721 = vmatpush1.msra.mxu1 %v278_v10  ;;  %v253_v58 = vld [vmem:[%s1084_s28 + $0x168] sm:$0xff]  ;;  %v252_v60 = vld [vmem:[%s1084_s28 + $0x160] sm:$0xff]  ;;  %v255_v62 = vld [vmem:[%s1084_s28 + $0x178] sm:$0xff] }
  0x60   : > { %326 = vmatprep.subr.mxu0 %v938_v0  ;;  %690 = vmatprep.subr.mxu1 %v938_v0  ;;  %v222_v63 = vld [vmem:[%s1084_s28 + $0x70] sm:$0xff]  ;;  %v225_v1 = vld [vmem:[%s1084_s28 + $0x88] sm:$0xff]  ;;  %v224_v3 = vld [vmem:[%s1084_s28 + $0x80] sm:$0xff] }
  0x61   : > { %327 = vmatpush1.msra.mxu0 %v277_v11  ;;  %722 = vmatpush1.msra.mxu1 %v277_v11  ;;  %v257_v2 = vld [vmem:[%s1084_s28 + $0x188] sm:$0xff]  ;;  %v256_v4 = vld [vmem:[%s1084_s28 + $0x180] sm:$0xff]  ;;  %v227_v5 = vld [vmem:[%s1084_s28 + $0x98] sm:$0xff] }
  0x62   : > { %328 = vmatprep.subr.mxu0 %v938_v0  ;;  %691 = vmatprep.subr.mxu1 %v938_v0  ;;  %v259_v6 = vld [vmem:[%s1084_s28 + $0x198] sm:$0xff]  ;;  %v226_v7 = vld [vmem:[%s1084_s28 + $0x90] sm:$0xff]  ;;  %v229_v9 = vld [vmem:[%s1084_s28 + $0xa8] sm:$0xff] }
  0x63   : > { %329 = vmatpush1.msra.mxu0 %v276_v12  ;;  %723 = vmatpush1.msra.mxu1 %v276_v12  ;;  %v258_v8 = vld [vmem:[%s1084_s28 + $0x190] sm:$0xff]  ;;  %v261_v10 = vld [vmem:[%s1084_s28 + $0x1a8] sm:$0xff]  ;;  %v228_v11 = vld [vmem:[%s1084_s28 + $0xa0] sm:$0xff] }
  0x64   : > { %330 = vmatprep.subr.mxu0 %v938_v0  ;;  %692 = vmatprep.subr.mxu1 %v938_v0  ;;  %v260_v12 = vld [vmem:[%s1084_s28 + $0x1a0] sm:$0xff] }
  0x65   : > { %331 = vmatpush1.msra.mxu0 %v275_v13  ;;  %724 = vmatpush1.msra.mxu1 %v275_v13  ;;  %v231_v13 = vld [vmem:[%s1084_s28 + $0xb8] sm:$0xff] }
  0x66   : > { %332 = vmatprep.subr.mxu0 %v938_v0  ;;  %693 = vmatprep.subr.mxu1 %v938_v0 }
  0x67   : > { %333 = vmatpush1.msra.mxu0 %v274_v14  ;;  %725 = vmatpush1.msra.mxu1 %v274_v14  ;;  %v263_v14 = vld [vmem:[%s1084_s28 + $0x1b8] sm:$0xff] }
  0x68   : > { %334 = vmatprep.subr.mxu0 %v938_v0  ;;  %694 = vmatprep.subr.mxu1 %v938_v0 }
  0x69   : > { %335 = vmatpush1.msra.mxu0 %v273_v15  ;;  %726 = vmatpush1.msra.mxu1 %v273_v15  ;;  %v230_v15 = vld [vmem:[%s1084_s28 + $0xb0] sm:$0xff] }
  0x6a   : > { %336 = vmatprep.subr.mxu0 %v938_v0  ;;  %695 = vmatprep.subr.mxu1 %v938_v0 }
  0x6b   : > { %337 = vmatpush1.msra.mxu0 %v272_v16  ;;  %727 = vmatpush1.msra.mxu1 %v272_v16  ;;  %v262_v16 = vld [vmem:[%s1084_s28 + $0x1b0] sm:$0xff] }
  0x6c   : > { %338 = vmatprep.subr.mxu0 %v938_v0  ;;  %696 = vmatprep.subr.mxu1 %v938_v0 }
  0x6d   : > { %339 = vmatpush2.msra.mxu0 %v303_v17  ;;  %728 = vmatpush2.msra.mxu1 %v303_v17  ;;  %v233_v17 = vld [vmem:[%s1084_s28 + $0xc8] sm:$0xff] }
  0x6e   : > { %340 = vmatprep.subr.mxu0 %v938_v0  ;;  %697 = vmatprep.subr.mxu1 %v938_v0 }
  0x6f   : > { %341 = vmatpush2.msra.mxu0 %v302_v18  ;;  %729 = vmatpush2.msra.mxu1 %v302_v18  ;;  %v265_v18 = vld [vmem:[%s1084_s28 + $0x1c8] sm:$0xff] }
  0x70   : > { %342 = vmatprep.subr.mxu0 %v938_v0  ;;  %698 = vmatprep.subr.mxu1 %v938_v0 }
  0x71   : > { %343 = vmatpush2.msra.mxu0 %v301_v19  ;;  %730 = vmatpush2.msra.mxu1 %v301_v19  ;;  %v232_v19 = vld [vmem:[%s1084_s28 + $0xc0] sm:$0xff] }
  0x72   : > { %344 = vmatprep.subr.mxu0 %v938_v0  ;;  %699 = vmatprep.subr.mxu1 %v938_v0 }
  0x73   : > { %345 = vmatpush2.msra.mxu0 %v300_v20  ;;  %731 = vmatpush2.msra.mxu1 %v300_v20  ;;  %v264_v20 = vld [vmem:[%s1084_s28 + $0x1c0] sm:$0xff] }
  0x74   : > { %346 = vmatprep.subr.mxu0 %v938_v0  ;;  %700 = vmatprep.subr.mxu1 %v938_v0 }
  0x75   : > { %347 = vmatpush2.msra.mxu0 %v299_v21  ;;  %732 = vmatpush2.msra.mxu1 %v299_v21  ;;  %v235_v21 = vld [vmem:[%s1084_s28 + $0xd8] sm:$0xff] }
  0x76   : > { %348 = vmatprep.subr.mxu0 %v938_v0  ;;  %701 = vmatprep.subr.mxu1 %v938_v0 }
  0x77   : > { %349 = vmatpush2.msra.mxu0 %v298_v22  ;;  %733 = vmatpush2.msra.mxu1 %v298_v22  ;;  %v267_v22 = vld [vmem:[%s1084_s28 + $0x1d8] sm:$0xff] }
  0x78   : > { %350 = vmatprep.subr.mxu0 %v938_v0  ;;  %702 = vmatprep.subr.mxu1 %v938_v0 }
  0x79   : > { %351 = vmatpush2.msra.mxu0 %v297_v23  ;;  %734 = vmatpush2.msra.mxu1 %v297_v23  ;;  %v234_v23 = vld [vmem:[%s1084_s28 + $0xd0] sm:$0xff] }
  0x7a   : > { %352 = vmatprep.subr.mxu0 %v938_v0  ;;  %703 = vmatprep.subr.mxu1 %v938_v0 }
  0x7b   : > { %353 = vmatpush2.msra.mxu0 %v296_v24  ;;  %735 = vmatpush2.msra.mxu1 %v296_v24  ;;  %v266_v24 = vld [vmem:[%s1084_s28 + $0x1d0] sm:$0xff] }
  0x7c   : > { %354 = vmatprep.subr.mxu0 %v938_v0  ;;  %704 = vmatprep.subr.mxu1 %v938_v0 }
  0x7d   : > { %355 = vmatpush2.msra.mxu0 %v295_v25  ;;  %736 = vmatpush2.msra.mxu1 %v295_v25  ;;  %v237_v25 = vld [vmem:[%s1084_s28 + $0xe8] sm:$0xff] }
  0x7e   : > { %356 = vmatprep.subr.mxu0 %v938_v0  ;;  %705 = vmatprep.subr.mxu1 %v938_v0 }
  0x7f   : > { %357 = vmatpush2.msra.mxu0 %v294_v26  ;;  %737 = vmatpush2.msra.mxu1 %v294_v26  ;;  %v269_v26 = vld [vmem:[%s1084_s28 + $0x1e8] sm:$0xff] }
  0x80   : > { %358 = vmatprep.subr.mxu0 %v938_v0  ;;  %706 = vmatprep.subr.mxu1 %v938_v0 }
  0x81   : > { %359 = vmatpush2.msra.mxu0 %v293_v27  ;;  %738 = vmatpush2.msra.mxu1 %v293_v27  ;;  %v236_v27 = vld [vmem:[%s1084_s28 + $0xe0] sm:$0xff] }
  0x82   : > { %360 = vmatprep.subr.mxu0 %v938_v0  ;;  %707 = vmatprep.subr.mxu1 %v938_v0 }
  0x83   : > { %361 = vmatpush2.msra.mxu0 %v292_v28  ;;  %739 = vmatpush2.msra.mxu1 %v292_v28  ;;  %v268_v28 = vld [vmem:[%s1084_s28 + $0x1e0] sm:$0xff] }
  0x84   : > { %362 = vmatprep.subr.mxu0 %v938_v0  ;;  %708 = vmatprep.subr.mxu1 %v938_v0 }
  0x85   : > { %363 = vmatpush2.msra.mxu0 %v291_v29  ;;  %740 = vmatpush2.msra.mxu1 %v291_v29  ;;  %v239_v29 = vld [vmem:[%s1084_s28 + $0xf8] sm:$0xff] }
  0x86   : > { %364 = vmatprep.subr.mxu0 %v938_v0  ;;  %709 = vmatprep.subr.mxu1 %v938_v0 }
  0x87   : > { %365 = vmatpush2.msra.mxu0 %v290_v30  ;;  %741 = vmatpush2.msra.mxu1 %v290_v30  ;;  %v271_v30 = vld [vmem:[%s1084_s28 + $0x1f8] sm:$0xff] }
  0x88   : > { %366 = vmatprep.subr.mxu0 %v938_v0  ;;  %710 = vmatprep.subr.mxu1 %v938_v0 }
  0x89   : > { %367 = vmatpush2.msra.mxu0 %v289_v31  ;;  %742 = vmatpush2.msra.mxu1 %v289_v31  ;;  %v238_v31 = vld [vmem:[%s1084_s28 + $0xf0] sm:$0xff] }
  0x8a   : > { %368 = vmatprep.subr.mxu0 %v938_v0  ;;  %711 = vmatprep.subr.mxu1 %v938_v0  ;;  %v254_v0 = vld [vmem:[%s1084_s28 + $0x170] sm:$0xff] }
  0x8b   : > { %369 = vmatpush2.msra.mxu0 %v288_v32  ;;  %743 = vmatpush2.msra.mxu1 %v288_v32  ;;  %v270_v32 = vld [vmem:[%s1084_s28 + $0x1f0] sm:$0xff] }
  0x8c   : > { %370 = vmatprep.mubr.f32.mxu0 %v209_v33  ;;  %450 = vmatprep.mubr.f32.mxu1 %v241_v34  ;;  %v1223_v33 = vstv %s304_s19 }
  0x8d   : > { %371 = vmatmul.mubr.f32.vlgmr.msra.gmra.mxu0 %v208_v35  ;;  %451 = vmatmul.mubr.f32.vlgmr.msra.gmra.mxu1 %v240_v36 }
  0x8e   : > { %375 = vmatprep.mubr.f32.mxu0 %v211_v37  ;;  %455 = vmatprep.mubr.f32.mxu1 %v243_v38 }
  0x91   : > { %376 = vmatmul.mubr.f32.gmra.mxu0 %v210_v39  ;;  %456 = vmatmul.mubr.f32.gmra.mxu1 %v242_v40 }
  0x92   : > { %380 = vmatprep.mubr.f32.mxu0 %v213_v41  ;;  %460 = vmatprep.mubr.f32.mxu1 %v245_v42 }
  0x95   : > { %381 = vmatmul.mubr.f32.gmra.mxu0 %v212_v43  ;;  %461 = vmatmul.mubr.f32.gmra.mxu1 %v244_v44 }
  0x96   : > { %385 = vmatprep.mubr.f32.mxu0 %v215_v45  ;;  %465 = vmatprep.mubr.f32.mxu1 %v247_v46 }
  0x99   : > { %386 = vmatmul.mubr.f32.gmra.mxu0 %v214_v47  ;;  %466 = vmatmul.mubr.f32.gmra.mxu1 %v246_v48 }
  0x9a   : > { %390 = vmatprep.mubr.f32.mxu0 %v217_v49  ;;  %470 = vmatprep.mubr.f32.mxu1 %v249_v50 }
  0x9d   : > { %391 = vmatmul.mubr.f32.gmra.mxu0 %v216_v51  ;;  %471 = vmatmul.mubr.f32.gmra.mxu1 %v248_v52 }
  0x9e   : > { %395 = vmatprep.mubr.f32.mxu0 %v219_v53  ;;  %475 = vmatprep.mubr.f32.mxu1 %v251_v54 }
  0xa1   : > { %396 = vmatmul.mubr.f32.gmra.mxu0 %v218_v55  ;;  %476 = vmatmul.mubr.f32.gmra.mxu1 %v250_v56 }
  0xa2   : > { %400 = vmatprep.mubr.f32.mxu0 %v221_v57  ;;  %480 = vmatprep.mubr.f32.mxu1 %v253_v58 }
  0xa5   : > { %401 = vmatmul.mubr.f32.gmra.mxu0 %v220_v59  ;;  %481 = vmatmul.mubr.f32.gmra.mxu1 %v252_v60 }
  0xa6   : > { %405 = vmatprep.mubr.f32.mxu0 %v223_v61  ;;  %485 = vmatprep.mubr.f32.mxu1 %v255_v62 }
  0xa9   : > { %406 = vmatmul.mubr.f32.gmra.mxu0 %v222_v63  ;;  %486 = vmatmul.mubr.f32.gmra.mxu1 %v254_v0 }
  0xaa   : > { %410 = vmatprep.mubr.f32.mxu0 %v225_v1  ;;  %490 = vmatprep.mubr.f32.mxu1 %v257_v2 }
  0xad   : > { %411 = vmatmul.mubr.f32.gmra.mxu0 %v224_v3  ;;  %491 = vmatmul.mubr.f32.gmra.mxu1 %v256_v4 }
  0xae   : > { %415 = vmatprep.mubr.f32.mxu0 %v227_v5  ;;  %495 = vmatprep.mubr.f32.mxu1 %v259_v6 }
  0xb1   : > { %416 = vmatmul.mubr.f32.gmra.mxu0 %v226_v7  ;;  %496 = vmatmul.mubr.f32.gmra.mxu1 %v258_v8 }
  0xb2   : > { %420 = vmatprep.mubr.f32.mxu0 %v229_v9  ;;  %500 = vmatprep.mubr.f32.mxu1 %v261_v10 }
  0xb5   : > { %421 = vmatmul.mubr.f32.gmra.mxu0 %v228_v11  ;;  %501 = vmatmul.mubr.f32.gmra.mxu1 %v260_v12 }
  0xb6   : > { %425 = vmatprep.mubr.f32.mxu0 %v231_v13  ;;  %505 = vmatprep.mubr.f32.mxu1 %v263_v14 }
  0xb9   : > { %426 = vmatmul.mubr.f32.gmra.mxu0 %v230_v15  ;;  %506 = vmatmul.mubr.f32.gmra.mxu1 %v262_v16 }
  0xba   : > { %430 = vmatprep.mubr.f32.mxu0 %v233_v17  ;;  %510 = vmatprep.mubr.f32.mxu1 %v265_v18 }
  0xbd   : > { %431 = vmatmul.mubr.f32.gmra.mxu0 %v232_v19  ;;  %511 = vmatmul.mubr.f32.gmra.mxu1 %v264_v20 }
  0xbe   : > { %435 = vmatprep.mubr.f32.mxu0 %v235_v21  ;;  %515 = vmatprep.mubr.f32.mxu1 %v267_v22 }
  0xc1   : > { %436 = vmatmul.mubr.f32.gmra.mxu0 %v234_v23  ;;  %516 = vmatmul.mubr.f32.gmra.mxu1 %v266_v24 }
  0xc2   : > { %440 = vmatprep.mubr.f32.mxu0 %v237_v25  ;;  %520 = vmatprep.mubr.f32.mxu1 %v269_v26 }
  0xc5   : > { %441 = vmatmul.mubr.f32.gmra.mxu0 %v236_v27  ;;  %521 = vmatmul.mubr.f32.gmra.mxu1 %v268_v28 }
  0xc6   : > { %445 = vmatprep.mubr.f32.mxu0 %v239_v29  ;;  %525 = vmatprep.mubr.f32.mxu1 %v271_v30 }
  0xc9   : > { %446 = vmatmul.mubr.f32.gmra.mxu0 %v238_v31  ;;  %526 = vmatmul.mubr.f32.gmra.mxu1 %v270_v32 }
 0x14d   : > { %v372_v34 = vpop.f32.mrf.mxu0  ;;  %v452_v35 = vpop.f32.mrf.mxu1 }
 0x14e   : > { %v373_v36 = vadd.f32 %v372_v34, %v1223_v33  ;;  %v453_v37 = vadd.f32 %v452_v35, %v1223_v33 }
 0x14f   : > { %v374_v38 = vpop.f32.mrf.mxu0  ;;  %v454_v39 = vpop.f32.mrf.mxu1 }
 0x150   : > { %531 = vst [vmem:[%s1227_s13] sm:$0xff] %v373_v36  ;;  %547 = vst [vmem:[%s1227_s13 + $0x80] sm:$0xff] %v453_v37 }
 0x151   : > { %v377_v40 = vpop.f32.mrf.mxu0  ;;  %v457_v41 = vpop.f32.mrf.mxu1 }
 0x152   : > { %v378_v42 = vadd.f32 %v377_v40, %v1223_v33  ;;  %v458_v43 = vadd.f32 %v457_v41, %v1223_v33 }
 0x153   : > { %v379_v44 = vpop.f32.mrf.mxu0  ;;  %v459_v45 = vpop.f32.mrf.mxu1 }
 0x154   : > { %532 = vst [vmem:[%s1227_s13 + $0x8] sm:$0xff] %v378_v42  ;;  %548 = vst [vmem:[%s1227_s13 + $0x88] sm:$0xff] %v458_v43 }
 0x155   : > { %v382_v46 = vpop.f32.mrf.mxu0  ;;  %v462_v47 = vpop.f32.mrf.mxu1 }
 0x156   : > { %v383_v48 = vadd.f32 %v382_v46, %v1223_v33  ;;  %v463_v49 = vadd.f32 %v462_v47, %v1223_v33 }
 0x157   : > { %v384_v50 = vpop.f32.mrf.mxu0  ;;  %v464_v51 = vpop.f32.mrf.mxu1 }
 0x158   : > { %533 = vst [vmem:[%s1227_s13 + $0x10] sm:$0xff] %v383_v48  ;;  %549 = vst [vmem:[%s1227_s13 + $0x90] sm:$0xff] %v463_v49 }
 0x159   : > { %v387_v52 = vpop.f32.mrf.mxu0  ;;  %v467_v53 = vpop.f32.mrf.mxu1 }
 0x15a   : > { %v388_v54 = vadd.f32 %v387_v52, %v1223_v33  ;;  %v468_v55 = vadd.f32 %v467_v53, %v1223_v33 }
 0x15b   : > { %v389_v56 = vpop.f32.mrf.mxu0  ;;  %v469_v57 = vpop.f32.mrf.mxu1 }
 0x15c   : > { %534 = vst [vmem:[%s1227_s13 + $0x18] sm:$0xff] %v388_v54  ;;  %550 = vst [vmem:[%s1227_s13 + $0x98] sm:$0xff] %v468_v55 }
 0x15d   : > { %v392_v58 = vpop.f32.mrf.mxu0  ;;  %v472_v59 = vpop.f32.mrf.mxu1 }
 0x15e   : > { %v393_v60 = vadd.f32 %v392_v58, %v1223_v33  ;;  %v473_v61 = vadd.f32 %v472_v59, %v1223_v33 }
 0x15f   : > { %v394_v62 = vpop.f32.mrf.mxu0  ;;  %v474_v63 = vpop.f32.mrf.mxu1 }
 0x160   : > { %535 = vst [vmem:[%s1227_s13 + $0x20] sm:$0xff] %v393_v60  ;;  %551 = vst [vmem:[%s1227_s13 + $0xa0] sm:$0xff] %v473_v61 }
 0x161   : > { %v397_v0 = vpop.f32.mrf.mxu0  ;;  %v477_v1 = vpop.f32.mrf.mxu1 }
 0x162   : > { %v398_v2 = vadd.f32 %v397_v0, %v1223_v33  ;;  %v478_v3 = vadd.f32 %v477_v1, %v1223_v33 }
 0x163   : > { %v399_v4 = vpop.f32.mrf.mxu0  ;;  %v479_v5 = vpop.f32.mrf.mxu1 }
 0x164   : > { %536 = vst [vmem:[%s1227_s13 + $0x28] sm:$0xff] %v398_v2  ;;  %552 = vst [vmem:[%s1227_s13 + $0xa8] sm:$0xff] %v478_v3 }
 0x165   : > { %v402_v6 = vpop.f32.mrf.mxu0  ;;  %v482_v7 = vpop.f32.mrf.mxu1 }
 0x166   : > { %v403_v8 = vadd.f32 %v402_v6, %v1223_v33  ;;  %v483_v9 = vadd.f32 %v482_v7, %v1223_v33 }
 0x167   : > { %v404_v10 = vpop.f32.mrf.mxu0  ;;  %v484_v11 = vpop.f32.mrf.mxu1 }
 0x168   : > { %537 = vst [vmem:[%s1227_s13 + $0x30] sm:$0xff] %v403_v8  ;;  %553 = vst [vmem:[%s1227_s13 + $0xb0] sm:$0xff] %v483_v9 }
 0x169   : > { %v407_v12 = vpop.f32.mrf.mxu0  ;;  %v487_v13 = vpop.f32.mrf.mxu1 }
 0x16a   : > { %v408_v14 = vadd.f32 %v407_v12, %v1223_v33  ;;  %v488_v15 = vadd.f32 %v487_v13, %v1223_v33 }
 0x16b   : > { %v409_v16 = vpop.f32.mrf.mxu0  ;;  %v489_v17 = vpop.f32.mrf.mxu1 }
 0x16c   : > { %538 = vst [vmem:[%s1227_s13 + $0x38] sm:$0xff] %v408_v14  ;;  %554 = vst [vmem:[%s1227_s13 + $0xb8] sm:$0xff] %v488_v15 }
 0x16d   : > { %v412_v18 = vpop.f32.mrf.mxu0  ;;  %v492_v19 = vpop.f32.mrf.mxu1 }
 0x16e   : > { %v413_v20 = vadd.f32 %v412_v18, %v1223_v33  ;;  %v493_v21 = vadd.f32 %v492_v19, %v1223_v33 }
 0x16f   : > { %v414_v22 = vpop.f32.mrf.mxu0  ;;  %v494_v23 = vpop.f32.mrf.mxu1 }
 0x170   : > { %539 = vst [vmem:[%s1227_s13 + $0x40] sm:$0xff] %v413_v20  ;;  %555 = vst [vmem:[%s1227_s13 + $0xc0] sm:$0xff] %v493_v21 }
 0x171   : > { %v417_v24 = vpop.f32.mrf.mxu0  ;;  %v497_v25 = vpop.f32.mrf.mxu1 }
 0x172   : > { %v418_v26 = vadd.f32 %v417_v24, %v1223_v33  ;;  %v498_v27 = vadd.f32 %v497_v25, %v1223_v33 }
 0x173   : > { %v419_v28 = vpop.f32.mrf.mxu0  ;;  %v499_v29 = vpop.f32.mrf.mxu1 }
 0x174   : > { %540 = vst [vmem:[%s1227_s13 + $0x48] sm:$0xff] %v418_v26  ;;  %556 = vst [vmem:[%s1227_s13 + $0xc8] sm:$0xff] %v498_v27 }
 0x175   : > { %v422_v30 = vpop.f32.mrf.mxu0  ;;  %v502_v31 = vpop.f32.mrf.mxu1 }
 0x176   : > { %v423_v32 = vadd.f32 %v422_v30, %v1223_v33  ;;  %v503_v34 = vadd.f32 %v502_v31, %v1223_v33 }
 0x177   : > { %v424_v35 = vpop.f32.mrf.mxu0  ;;  %v504_v36 = vpop.f32.mrf.mxu1 }
 0x178   : > { %541 = vst [vmem:[%s1227_s13 + $0x50] sm:$0xff] %v423_v32  ;;  %557 = vst [vmem:[%s1227_s13 + $0xd0] sm:$0xff] %v503_v34 }
 0x179   : > { %v427_v37 = vpop.f32.mrf.mxu0  ;;  %v507_v38 = vpop.f32.mrf.mxu1 }
 0x17a   : > { %v428_v39 = vadd.f32 %v427_v37, %v1223_v33  ;;  %v508_v40 = vadd.f32 %v507_v38, %v1223_v33 }
 0x17b   : > { %v429_v41 = vpop.f32.mrf.mxu0  ;;  %v509_v42 = vpop.f32.mrf.mxu1 }
 0x17c   : > { %542 = vst [vmem:[%s1227_s13 + $0x58] sm:$0xff] %v428_v39  ;;  %558 = vst [vmem:[%s1227_s13 + $0xd8] sm:$0xff] %v508_v40 }
 0x17d   : > { %v432_v43 = vpop.f32.mrf.mxu0  ;;  %v512_v44 = vpop.f32.mrf.mxu1 }
 0x17e   : > { %v433_v45 = vadd.f32 %v432_v43, %v1223_v33  ;;  %v513_v46 = vadd.f32 %v512_v44, %v1223_v33 }
 0x17f   : > { %v434_v47 = vpop.f32.mrf.mxu0  ;;  %v514_v48 = vpop.f32.mrf.mxu1 }
 0x180   : > { %543 = vst [vmem:[%s1227_s13 + $0x60] sm:$0xff] %v433_v45  ;;  %559 = vst [vmem:[%s1227_s13 + $0xe0] sm:$0xff] %v513_v46 }
 0x181   : > { %v437_v49 = vpop.f32.mrf.mxu0  ;;  %v517_v50 = vpop.f32.mrf.mxu1 }
 0x182   : > { %v438_v51 = vadd.f32 %v437_v49, %v1223_v33  ;;  %v518_v52 = vadd.f32 %v517_v50, %v1223_v33 }
 0x183   : > { %v439_v53 = vpop.f32.mrf.mxu0  ;;  %v519_v54 = vpop.f32.mrf.mxu1 }
 0x184   : > { %544 = vst [vmem:[%s1227_s13 + $0x68] sm:$0xff] %v438_v51  ;;  %560 = vst [vmem:[%s1227_s13 + $0xe8] sm:$0xff] %v518_v52 }
 0x185   : > { %v442_v55 = vpop.f32.mrf.mxu0  ;;  %v522_v56 = vpop.f32.mrf.mxu1 }
 0x186   : > { %v443_v57 = vadd.f32 %v442_v55, %v1223_v33  ;;  %v523_v58 = vadd.f32 %v522_v56, %v1223_v33 }
 0x187   : > { %v444_v59 = vpop.f32.mrf.mxu0  ;;  %v524_v60 = vpop.f32.mrf.mxu1 }
 0x188   : > { %545 = vst [vmem:[%s1227_s13 + $0x70] sm:$0xff] %v443_v57  ;;  %561 = vst [vmem:[%s1227_s13 + $0xf0] sm:$0xff] %v523_v58 }
 0x189   : > { %v447_v61 = vpop.f32.mrf.mxu0  ;;  %v527_v62 = vpop.f32.mrf.mxu1 }
 0x18a   : > { %v448_v63 = vadd.f32 %v447_v61, %v1223_v33  ;;  %v528_v0 = vadd.f32 %v527_v62, %v1223_v33 }
 0x18b   : > { %v449_v1 = vpop.f32.mrf.mxu0  ;;  %v529_v2 = vpop.f32.mrf.mxu1 }
 0x18c   : > { %546 = vst [vmem:[%s1227_s13 + $0x78] sm:$0xff] %v448_v63  ;;  %562 = vst [vmem:[%s1227_s13 + $0xf8] sm:$0xff] %v528_v0 }
 0x18d   : > { %875 = shalt.err (!%p872_p0)
}
 0x18e   : > { %s876_s10 = scalar_lea.hbm %s1292_s30, 4096  ;;  %s880_s26 = scalar_lea.hbm %s1343_s3, 16384 }
 0x18f   : > { %p877_p5 = scmp.ne.s32.totalorder %s1292_s30, %s876_s10  ;;  %p881_p4 = scmp.lt.s32.totalorder %s1292_s30, %s1343_s3 }
 0x190   : > { %p882_p6 = scmp.lt.s32.totalorder %s880_s26, %s876_s10 }
 0x191   : > { %p878_p9 = pnand %p877_p5, %p1359_p10 }
 0x192   : > { %p883_p8 = por %p882_p6, %p881_p4 }
 0x193   : > { %p879_p1 = pneg %p878_p9 }
 0x195   : > { %p884_p3 = pnand %p883_p8, %p879_p1 }
 0x197   : > { %887 = shalt.err (!%p884_p3)
}
 0x198   : > { %s940_s19 = smov 128   ;;  %s941_s21 = smov 8  }
 0x199   : > { %750 = dma.vmem_to_hbm [thread:$0]  (%p1359_p10), %s1294_s23, 4096, %s1292_s30, %s564_s0, %s940_s19, %s940_s19, %s941_s21  }
 0x19a PF: > { %p767_p7 = scmp.ge.s32.totalorder %s930_s17, 2  ;;  %s592_s13 = sand.u32 1, %s918_s14  }
 0x19b   : > { %p1360_p11 = scmp.ne.s32.totalorder %s1349_s20, 0  ;;  %s593_s22 = scalar_lea.sflag [#allocation5], %s592_s13 }
 0x19d   : > { %p761_p12 = pnand %p767_p7, %p1360_p11 }
 0x19f   : > { %p762_p2 = pneg %p761_p12 }
 0x1a1   : > { %913 = dma.done.wait (%p762_p2), %s593_s22, 4096  }
 0x1a2   : > { %915 = vsyncadd (%p762_p2), %s593_s22, 4294963200  ;;  %p18_p13 = scmp.ge.s32.totalorder %s1018_s25, 6   ;;  %s1361_s14 = smov %s922_s15 }
 0x1a3   : > { %s1362_s15 = smov %s926_s16  ;;  %s1363_s16 = smov %s1035_s6 }
 0x1a4   : > { %s1364_s17 = smov %s1018_s25  ;;  %20 = sbr.rel (!%p18_p13) target bundleno = 8 (0x8), region = 81 }
 0x1a9   :  { %598 = vsyncpa [#allocation4], 1 }
 0x1aa   :  { %600 = vsyncpa [#allocation4 + $0x1], 1 }
 0x1ab   :  { %601 = vsyncpa [#allocation7], 1 }
 0x1ac   :  { %602 = vsyncpa [#allocation5], 1 }
 0x1ad   :  { %604 = vsyncpa [#allocation5 + $0x1], 1 }

</bundles_post_ra>
